<compile_context>
chip_gen: v6e
topology: v6e:2x2x1
jax: 0.10.0
libtpu: 0.0.40
codegen_flags: <defaults>
</compile_context>

<pallas_src>
import functools

import jax
import jax.numpy as jnp
from jax.experimental import pallas as pl
from jax.experimental.pallas import tpu as pltpu


def _round_up(x: int, m: int) -> int:
    return ((x + m - 1) // m) * m


def _focal_loss_kernel(logits_ref, targets_ref, alpha_ref, out_ref, *,
                       gamma: float, batch: int, reduce_in_kernel: bool):
    """One batch tile, fully (8,128)-dense.

    logits_ref : [C, TS, 128]  class-major; each class slab is dense sublanes x lanes
    targets_ref: [TS, 128]     int32
    alpha_ref  : [C]           float32 in SMEM (scalar reads)
    out_ref    : [8, 128]      per-tile partial sums      (reduce_in_kernel=True)
                 [TS, 128]     per-example losses         (reduce_in_kernel=False)
    """
    num_classes = logits_ref.shape[0]
    ts = targets_ref.shape[0]                      # tile rows (multiple of 8)

    t = targets_ref[...]                           # [TS, 128] int32

    # Running max over the class axis — small unrolled loop of dense VPU maxes.
    m = logits_ref[0].astype(jnp.float32)
    for c in range(1, num_classes):
        m = jnp.maximum(m, logits_ref[c].astype(jnp.float32))

    # Single pass over classes: sum-exp, masked gather of the target logit,
    # and alpha gather.  No [C, TS, 128] one-hot tensor is materialized.
    sumexp = jnp.zeros((ts, 128), jnp.float32)
    gathered = jnp.zeros((ts, 128), jnp.float32)
    alpha_t = jnp.zeros((ts, 128), jnp.float32)
    for c in range(num_classes):
        s_c = logits_ref[c].astype(jnp.float32) - m            # [TS, 128]
        sumexp = sumexp + jnp.exp(s_c)
        sel = (t == c)
        gathered = jnp.where(sel, s_c, gathered)
        alpha_t = jnp.where(sel, alpha_ref[c], alpha_t)

    # logpt <= 0 so pt <= 1 and (1 - pt) >= 0 (guards the power numerically).
    logpt = jnp.minimum(gathered - jnp.log(sumexp), 0.0)
    pt = jnp.exp(logpt)
    q = jnp.maximum(1.0 - pt, 0.0)

    # (1 - pt) ** gamma: gamma-1 VPU multiplies for small integer gamma,
    # EUP pow only in the general case.
    if float(gamma).is_integer() and 0 <= int(gamma) <= 8:
        g = int(gamma)
        focal = jnp.ones_like(q) if g == 0 else q
        for _ in range(max(g - 1, 0)):
            focal = focal * q
    else:
        focal = jnp.power(q, jnp.float32(gamma))

    loss = -alpha_t * focal * logpt                            # [TS, 128]

    # Zero out padded examples (required for the in-kernel reduction; the
    # 'none' path slices them off in the wrapper anyway).
    rows = jax.lax.broadcasted_iota(jnp.int32, (ts, 128), 0)
    lanes = jax.lax.broadcasted_iota(jnp.int32, (ts, 128), 1)
    idx = (pl.program_id(0) * ts + rows) * 128 + lanes
    loss = jnp.where(idx < batch, loss, 0.0)

    if reduce_in_kernel:
        # Per-tile partial sum folded to one [8, 128] vreg-shaped slab
        # (layout-preserving reshape + dense adds) — tiny HBM writeback.
        out_ref[...] = jnp.sum(loss.reshape(ts // 8, 8, 128), axis=0)
    else:
        out_ref[...] = loss


def _choose_tiles(batch: int, num_classes: int, elt_bytes: int,
                  max_tile_rows=None):
    """Pick (tile_rows, num_tiles); tile_b = tile_rows * 128 examples/step."""
    rows = pl.cdiv(batch, 128)                     # 128 examples per sublane-row
    if max_tile_rows is None:
        # Per-example VMEM bytes: double-buffered logits + targets blocks,
        # per-example f32 output, and ~10 live f32 temporaries.
        bytes_per_ex = 2 * (num_classes * elt_bytes + 4) + 2 * 4 + 10 * 4
        budget = 20 * 1024 * 1024                  # headroom under 32 MiB scoped VMEM
        max_tile_rows = budget // (bytes_per_ex * 128)
        # Cap at 1024 rows (= 128K examples/step): MiB-scale DMA per step yet
        # safely inside v7x's per-core scoped VMEM; v5e/v6e could go larger but
        # this already amortizes the ~0.35 us/step overhead to a few percent.
        max_tile_rows = max(8, min(1024, (max_tile_rows // 8) * 8))

    if rows <= max_tile_rows:
        tile_rows = _round_up(rows, 8)
        num_tiles = 1
    else:
        # Keep >= 4 tiles and an even count so the v7x megacore split balances.
        num_tiles = max(4, pl.cdiv(rows, max_tile_rows))
        if num_tiles % 2:
            num_tiles += 1
        tile_rows = _round_up(pl.cdiv(rows, num_tiles), 8)
        num_tiles = pl.cdiv(rows, tile_rows)
    return tile_rows, num_tiles


def focal_loss_pallas(logits, targets, alpha, gamma=2.0, reduction="mean",
                      max_tile_rows=None):
    """logits: [B, C] float, targets: [B] int, alpha: [C] float."""
    B, C = logits.shape
    elt = jnp.dtype(logits.dtype).itemsize
    tile_rows, num_tiles = _choose_tiles(B, C, elt, max_tile_rows)
    ns = num_tiles * tile_rows
    b_pad = ns * 128
    pad = b_pad - B

    # One extra HBM pass: [B, C] -> [C, B_pad] (the reshape to [C, NS, 128] is
    # free).  bf16 logits stay bf16 here.  TODO(synk): take class-major logits
    # from the producer to remove this pass.
    logits_t = jnp.pad(logits.T, ((0, 0), (0, pad))).reshape(C, ns, 128)
    targets_p = jnp.pad(targets.astype(jnp.int32), ((0, pad),)).reshape(ns, 128)
    alpha_v = alpha.astype(jnp.float32).reshape(C)

    reduce_in_kernel = reduction in ("mean", "sum")
    kernel = functools.partial(_focal_loss_kernel, gamma=float(gamma), batch=B,
                               reduce_in_kernel=reduce_in_kernel)

    if reduce_in_kernel:
        out_shape = jax.ShapeDtypeStruct((num_tiles * 8, 128), jnp.float32)
        out_spec = pl.BlockSpec((8, 128), lambda i: (i, 0))
        out_bytes = num_tiles * 8 * 128 * 4
    else:
        out_shape = jax.ShapeDtypeStruct((ns, 128), jnp.float32)
        out_spec = pl.BlockSpec((tile_rows, 128), lambda i: (i, 0))
        out_bytes = b_pad * 4

    cost = pl.CostEstimate(
        flops=int(12 * b_pad * C),
        transcendentals=int(b_pad * (C + 2)),
        bytes_accessed=int(b_pad * C * elt + b_pad * 4 + out_bytes + C * 4),
    )

    out = pl.pallas_call(
        kernel,
        out_shape=out_shape,
        grid=(num_tiles,),
        in_specs=[
            pl.BlockSpec((C, tile_rows, 128), lambda i: (0, i, 0)),   # logits
            pl.BlockSpec((tile_rows, 128), lambda i: (i, 0)),         # targets
            pl.BlockSpec(memory_space=pltpu.MemorySpace.SMEM),        # alpha [C]
        ],
        out_specs=out_spec,
        compiler_params=pltpu.CompilerParams(
            dimension_semantics=("parallel",),       # megacore-shardable
            vmem_limit_bytes=32 * 1024 * 1024,
        ),
        cost_estimate=cost,
    )(logits_t, targets_p, alpha_v)

    if reduction == "mean":
        return jnp.sum(out) / jnp.float32(B)
    if reduction == "sum":
        return jnp.sum(out)
    return out.reshape(b_pad)[:B]                   # 'none': per-example losses


def focal_loss(logits, targets, alpha=0.25, gamma=2.0, reduction="mean"):
    """Mirrors FocalLoss.__init__/forward: scalar alpha -> [1-a, a]."""
    if isinstance(alpha, (float, int)):
        alpha_vec = jnp.array([1.0 - alpha, alpha], dtype=jnp.float32)
    else:
        alpha_vec = jnp.asarray(alpha, dtype=jnp.float32)
    return focal_loss_pallas(logits, targets, alpha_vec, gamma, reduction)


def focal_loss_ref(logits, targets, alpha, gamma=2.0, reduction="mean"):
    logpt_all = jax.nn.log_softmax(logits.astype(jnp.float32), axis=1)
    logpt = jnp.take_along_axis(logpt_all, targets[:, None], axis=1)[:, 0]
    pt = jnp.exp(logpt)
    alpha_t = alpha[targets]
    loss = -alpha_t * (1.0 - pt) ** gamma * logpt
    if reduction == "mean":
        return loss.mean()
    if reduction == "sum":
        return loss.sum()
    return loss


if __name__ == "__main__":
    key = jax.random.PRNGKey(0)
    k1, k2, k3, k4 = jax.random.split(key, 4)

    # Small shapes matching the module: binary focal loss, scalar alpha.
    B, C = 8, 2
    alpha_scalar = 0.25
    gamma = 2.0
    alpha = jnp.array([1.0 - alpha_scalar, alpha_scalar], dtype=jnp.float32)
    logits = jax.random.normal(k1, (B, C), dtype=jnp.float32)
    targets = jax.random.randint(k2, (B,), 0, C, dtype=jnp.int32)

    for reduction in ("mean", "sum", "none"):
        out = jax.block_until_ready(
            focal_loss_pallas(logits, targets, alpha, gamma=gamma, reduction=reduction))
        ref = focal_loss_ref(logits, targets, alpha, gamma=gamma, reduction=reduction)
        if reduction == "none":
            assert out.shape == (B,), out.shape
        assert jnp.allclose(out, ref, atol=1e-5, rtol=1e-5), (reduction, out, ref)

    # Exercise multi-tile grid, padded-lane masking, vector alpha and the
    # non-integer-gamma path (tile size forced small to get >1 grid step).
    B2, C2 = 2000, 3
    alpha2 = jnp.array([0.2, 0.3, 0.5], dtype=jnp.float32)
    logits2 = jax.random.normal(k3, (B2, C2), dtype=jnp.float32)
    targets2 = jax.random.randint(k4, (B2,), 0, C2, dtype=jnp.int32)
    for reduction in ("mean", "none"):
        out = jax.block_until_ready(
            focal_loss_pallas(logits2, targets2, alpha2, gamma=1.5,
                              reduction=reduction, max_tile_rows=8))
        ref = focal_loss_ref(logits2, targets2, alpha2, gamma=1.5, reduction=reduction)
        assert jnp.allclose(out, ref, atol=1e-4, rtol=1e-4), (reduction, out, ref)

    print("KERNEL_OK")
</pallas_src>

<mosaic_0001>
module attributes {stable_mosaic.version = 11 : i64} {
  func.func @_focal_loss_kernel(%arg0: i32, %arg1: memref<2x8x128xf32, #tpu.memory_space<vmem>>, %arg2: memref<8x128xi32, #tpu.memory_space<vmem>>, %arg3: memref<2xf32, #tpu.memory_space<smem>>, %arg4: memref<8x128xf32, #tpu.memory_space<vmem>>) attributes {dimension_semantics = [#tpu.dimension_semantics<parallel>], iteration_bounds = array<i64: 1>, scalar_prefetch = 0 : i64, scratch_operands = 0 : i64, tpu.core_type = #tpu.core_type<tc>, window_params = [{transform_indices = @transform_0, window_bounds = array<i64: 2, 8, 128>}, {transform_indices = @transform_1, window_bounds = array<i64: 8, 128>}, {transform_indices = @transform_2, window_bounds = array<i64: 2>}, {transform_indices = @transform_3, window_bounds = array<i64: 8, 128>}]} {
    %c0 = arith.constant 0 : index
    %c0_0 = arith.constant 0 : index
    %0 = vector.load %arg2[%c0, %c0_0] : memref<8x128xi32, #tpu.memory_space<vmem>>, vector<8x128xi32>
    %c0_1 = arith.constant 0 : index
    %c0_2 = arith.constant 0 : index
    %c0_3 = arith.constant 0 : index
    %1 = vector.load %arg1[%c0_1, %c0_2, %c0_3] : memref<2x8x128xf32, #tpu.memory_space<vmem>>, vector<1x8x128xf32>
    %2 = vector.shape_cast %1 : vector<1x8x128xf32> to vector<8x128xf32>
    %c1 = arith.constant 1 : index
    %c0_4 = arith.constant 0 : index
    %c0_5 = arith.constant 0 : index
    %3 = vector.load %arg1[%c1, %c0_4, %c0_5] : memref<2x8x128xf32, #tpu.memory_space<vmem>>, vector<1x8x128xf32>
    %4 = vector.shape_cast %3 : vector<1x8x128xf32> to vector<8x128xf32>
    %5 = arith.maximumf %2, %4 : vector<8x128xf32>
    %cst = arith.constant 0.000000e+00 : f32
    %6 = vector.broadcast %cst : f32 to vector<8x128xf32>
    %cst_6 = arith.constant 0.000000e+00 : f32
    %7 = vector.broadcast %cst_6 : f32 to vector<8x128xf32>
    %cst_7 = arith.constant 0.000000e+00 : f32
    %8 = vector.broadcast %cst_7 : f32 to vector<8x128xf32>
    %c0_8 = arith.constant 0 : index
    %c0_9 = arith.constant 0 : index
    %c0_10 = arith.constant 0 : index
    %9 = vector.load %arg1[%c0_8, %c0_9, %c0_10] : memref<2x8x128xf32, #tpu.memory_space<vmem>>, vector<1x8x128xf32>
    %10 = vector.shape_cast %9 : vector<1x8x128xf32> to vector<8x128xf32>
    %11 = arith.subf %10, %5 : vector<8x128xf32>
    %12 = math.exp %11 : vector<8x128xf32>
    %13 = arith.addf %6, %12 : vector<8x128xf32>
    %c0_i32 = arith.constant 0 : i32
    %14 = vector.broadcast %c0_i32 : i32 to vector<8x128xi32>
    %15 = arith.cmpi eq, %0, %14 : vector<8x128xi32>
    %16 = arith.select %15, %11, %7 : vector<8x128xi1>, vector<8x128xf32>
    %c0_11 = arith.constant 0 : index
    %17 = memref.load %arg3[%c0_11] : memref<2xf32, #tpu.memory_space<smem>>
    %18 = vector.broadcast %17 : f32 to vector<8x128xf32>
    %19 = arith.select %15, %18, %8 : vector<8x128xi1>, vector<8x128xf32>
    %c1_12 = arith.constant 1 : index
    %c0_13 = arith.constant 0 : index
    %c0_14 = arith.constant 0 : index
    %20 = vector.load %arg1[%c1_12, %c0_13, %c0_14] : memref<2x8x128xf32, #tpu.memory_space<vmem>>, vector<1x8x128xf32>
    %21 = vector.shape_cast %20 : vector<1x8x128xf32> to vector<8x128xf32>
    %22 = arith.subf %21, %5 : vector<8x128xf32>
    %23 = math.exp %22 : vector<8x128xf32>
    %24 = arith.addf %13, %23 : vector<8x128xf32>
    %c1_i32 = arith.constant 1 : i32
    %25 = vector.broadcast %c1_i32 : i32 to vector<8x128xi32>
    %26 = arith.cmpi eq, %0, %25 : vector<8x128xi32>
    %27 = arith.select %26, %22, %16 : vector<8x128xi1>, vector<8x128xf32>
    %c1_15 = arith.constant 1 : index
    %28 = memref.load %arg3[%c1_15] : memref<2xf32, #tpu.memory_space<smem>>
    %29 = vector.broadcast %28 : f32 to vector<8x128xf32>
    %30 = arith.select %26, %29, %19 : vector<8x128xi1>, vector<8x128xf32>
    %31 = math.log %24 : vector<8x128xf32>
    %32 = arith.subf %27, %31 : vector<8x128xf32>
    %cst_16 = arith.constant 0.000000e+00 : f32
    %33 = vector.broadcast %cst_16 : f32 to vector<8x128xf32>
    %34 = arith.minimumf %32, %33 : vector<8x128xf32>
    %35 = math.exp %34 : vector<8x128xf32>
    %cst_17 = arith.constant 1.000000e+00 : f32
    %36 = vector.broadcast %cst_17 : f32 to vector<8x128xf32>
    %37 = arith.subf %36, %35 : vector<8x128xf32>
    %cst_18 = arith.constant 0.000000e+00 : f32
    %38 = vector.broadcast %cst_18 : f32 to vector<8x128xf32>
    %39 = arith.maximumf %37, %38 : vector<8x128xf32>
    %40 = arith.mulf %39, %39 : vector<8x128xf32>
    %cst_19 = arith.constant 0.000000e+00 : f32
    %41 = vector.broadcast %cst_19 : f32 to vector<8x128xf32>
    %42 = arith.subf %41, %30 : vector<8x128xf32>
    %43 = arith.mulf %42, %40 : vector<8x128xf32>
    %44 = arith.mulf %43, %34 : vector<8x128xf32>
    %45 = tpu.iota {dimensions = array<i32: 0>} : vector<8x128xi32>
    %46 = tpu.iota {dimensions = array<i32: 1>} : vector<8x128xi32>
    %c8_i32 = arith.constant 8 : i32
    %47 = arith.muli %arg0, %c8_i32 : i32
    %48 = vector.broadcast %47 : i32 to vector<8x128xi32>
    %49 = arith.addi %48, %45 : vector<8x128xi32>
    %c128_i32 = arith.constant 128 : i32
    %50 = vector.broadcast %c128_i32 : i32 to vector<8x128xi32>
    %51 = arith.muli %49, %50 : vector<8x128xi32>
    %52 = arith.addi %51, %46 : vector<8x128xi32>
    %c8_i32_20 = arith.constant 8 : i32
    %53 = vector.broadcast %c8_i32_20 : i32 to vector<8x128xi32>
    %54 = arith.cmpi slt, %52, %53 : vector<8x128xi32>
    %cst_21 = arith.constant 0.000000e+00 : f32
    %55 = vector.broadcast %cst_21 : f32 to vector<8x128xf32>
    %56 = arith.select %54, %44, %55 : vector<8x128xi1>, vector<8x128xf32>
    %57 = vector.shape_cast %56 : vector<8x128xf32> to vector<1x8x128xf32>
    %cst_22 = arith.constant dense<0.000000e+00> : vector<8x128xf32>
    %58 = vector.multi_reduction <add>, %57, %cst_22 [0] : vector<1x8x128xf32> to vector<8x128xf32>
    %c0_23 = arith.constant 0 : index
    %c0_24 = arith.constant 0 : index
    %59 = vector.load %arg4[%c0_23, %c0_24] : memref<8x128xf32, #tpu.memory_space<vmem>>, vector<8x128xf32>
    tpu.vector_store %arg4[%c0_23, %c0_24], %58 {strides = array<i32>} : memref<8x128xf32, #tpu.memory_space<vmem>>, vector<8x128xf32>,
    return
  }
  func.func @transform_0(%arg0: i32) -> (i32, i32, i32) {
    %c0_i32 = arith.constant 0 : i32
    %c0_i32_0 = arith.constant 0 : i32
    %c0_i32_1 = arith.constant 0 : i32
    return %c0_i32, %arg0, %c0_i32_0 : i32, i32, i32
  }
  func.func @transform_1(%arg0: i32) -> (i32, i32) {
    %c0_i32 = arith.constant 0 : i32
    %c0_i32_0 = arith.constant 0 : i32
    return %arg0, %c0_i32 : i32, i32
  }
  func.func @transform_2(%arg0: i32) -> i32 {
    %c0_i32 = arith.constant 0 : i32
    %c0_i32_0 = arith.constant 0 : i32
    return %c0_i32 : i32
  }
  func.func @transform_3(%arg0: i32) -> (i32, i32) {
    %c0_i32 = arith.constant 0 : i32
    %c0_i32_0 = arith.constant 0 : i32
    return %arg0, %c0_i32 : i32, i32
  }
}

</mosaic_0001>

<bundles_post_ra>
// kernel: tpu_custom_call.1
= control target key start
LH: loop header
LB: loop body
LE: loop exit
PB: predicated region body
PF: predicated region fallthrough
CT: control target
= control target key end

     0   :  { %8 = vsyncpa [#allocation3], 0  ;;  %s254_s0 = inlined_call_operand.hbm [shape: f32[2,8,128], index: 0, kind: input, shape index: {}]   ;;  %s255_s1 = inlined_call_operand.hbm [shape: s32[8,128], index: 1, kind: input, shape index: {}]   ;;  %s256_s2 = inlined_call_operand.vmem [shape: f32[2], index: 2, kind: input, shape index: {}]   ;;  %s257_s3 = inlined_call_operand.hbm [shape: f32[8,128], index: 3, kind: output, shape index: {}]  }
   0x1   :  { %9 = vsyncpa [#allocation7], 0 }
   0x2   :  { %10 = vsyncpa [#allocation5], 0 }
   0x3   :  { %11 = vsyncpa [#allocation4], 0  ;;  %s214_s12 = smov [#allocation2]  }
   0x4   :  { %s17_s13 = sshll.u32 %s214_s12, 4  ;;  %s18_s13 = int_to_ptr.vmem [resolvable:$true] %s17_s13 }
   0x5   :  { %s142_s14 = scalar_lea.vmem %s18_s13, 256  ;;  %p147_p1 = scmp.lt.s32.totalorder %s18_s13, %s18_s13 }
   0x6   :  { %p143_p0 = scmp.ne.s32.totalorder %s18_s13, %s142_s14  ;;  %p148_p2 = scmp.lt.s32.totalorder %s142_s14, %s142_s14 }
   0x8   :  { %p149_p3 = por %p148_p2, %p147_p1 }
   0xa   :  { %p150_p4 = pnand %p149_p3, %p143_p0 }
   0xc   :  { %153 = shalt.err (!%p150_p4)
}
   0xd   :  { %s215_s15 = smov 128   ;;  %s216_s16 = smov 8  }
   0xe   :  { %23 = dma.hbm_to_vmem [thread:$0]  %s254_s0, 256, %s18_s13, [#allocation3], %s215_s15, %s215_s15, %s216_s16  }
   0xf   :  { %s217_s19 = smov [#allocation6]   ;;  %s40_s23 = sshll.u32 %s256_s2, 4  ;;  %s41_s23 = int_to_ptr.vmem [resolvable:$true] %s40_s23 }
  0x10   :  { %s30_s20 = sshll.u32 %s217_s19, 4  ;;  %s31_s20 = int_to_ptr.vmem [resolvable:$true] %s30_s20 }
  0x11   :  { %s162_s24 = scalar_lea.vmem %s31_s20, 128  ;;  %p167_p6 = scmp.lt.s32.totalorder %s31_s20, %s31_s20 }
  0x12   :  { %p163_p5 = scmp.ne.s32.totalorder %s31_s20, %s162_s24  ;;  %p168_p7 = scmp.lt.s32.totalorder %s162_s24, %s162_s24 }
  0x14   :  { %p169_p8 = por %p168_p7, %p167_p6 }
  0x16   :  { %p170_p9 = pnand %p169_p8, %p163_p5 }
  0x18   :  { %173 = shalt.err (!%p170_p9)
}
  0x19   :  { %33 = dma.hbm_to_vmem [thread:$0]  %s255_s1, 128, %s31_s20, [#allocation7]  }
  0x1a   :  { %s174_s0 = scalar_lea.vmem %s41_s23, 16  ;;  %p179_p11 = scmp.lt.s32.totalorder %s41_s23, %s41_s23 }
  0x1b   :  { %p175_p10 = scmp.ne.s32.totalorder %s41_s23, %s174_s0  ;;  %p180_p12 = scmp.lt.s32.totalorder %s174_s0, %s174_s0 }
  0x1d   :  { %p181_p13 = por %p180_p12, %p179_p11 }
  0x1f   :  { %p182_p0 = pnand %p181_p13, %p175_p10 }
  0x21   :  { %185 = shalt.err (!%p182_p0)
}
  0x22   :  { %s218_s2 = smov [#allocation8]  }
  0x23   :  { %43 = dma.vmem_to_smem %s41_s23, 16, %s218_s2, [#allocation5]  }
  0x24   :  { %206 = dma.done.wait [#allocation3], 256  }
  0x25   :  { %207 = vsyncadd [#allocation3], 4294967040 }
  0x26   :  { %208 = dma.done.wait [#allocation7], 128  }
  0x27   :  { %209 = vsyncadd [#allocation7], 4294967168 }
  0x28   :  { %210 = dma.done.wait [#allocation5], 16  }
  0x29   :  { %211 = vsyncadd [#allocation5], 4294967280 }
  0x2a   :  { %53 = sfence }
  0x2b   :  { %v55_v0 = vld [vmem:[#allocation2] sm:$0xff]  ;;  %v57_v1 = vld [vmem:[#allocation2 + $0x8] sm:$0xff]  ;;  %v54_v10 = vld [vmem:[#allocation6] sm:$0xff]  ;;  %s65_s1 = sld [smem:[#allocation8]]  ;;  %v89_v18 = vlaneseq  ;;  %s219_s28 = smov [#allocation9]  }
  0x2c   :  { %v58_v2 = vmax.f32 %v55_v0, %v57_v1  ;;  %vm63_vm0 = vcmp.eq.s32.totalorder %v54_v10, 0  ;;  %vm72_vm1 = vcmp.eq.s32.totalorder %v54_v10, 1  ;;  %s119_s27 = sld [smem:[#allocation8 + $0x1]]  ;;  %s108_s29 = sshll.u32 %s219_s28, 4  ;;  %s109_s29 = int_to_ptr.vmem [resolvable:$true] %s108_s29 }
  0x2d   :  { %v90_v20 = vshrl.u32 %v89_v18, 7  ;;  %v92_v25 = vand.u32 127, %v89_v18  ;;  %s186_s30 = scalar_lea.vmem %s109_s29, 128  ;;  %p191_p2 = scmp.lt.s32.totalorder %s109_s29, %s109_s29 }
  0x2e   :  { %v59_v3 = vsub.f32 %v55_v0, %v58_v2  ;;  %v68_v4 = vsub.f32 %v57_v1, %v58_v2  ;;  %p187_p1 = scmp.ne.s32.totalorder %s109_s29, %s186_s30  ;;  %p192_p3 = scmp.lt.s32.totalorder %s186_s30, %s186_s30 }
  0x2f   :  { %v96_v26 = vmul.u32 128, %v90_v20 }
  0x30   :  { %v60_v5 = vmul.f32 1.442695, %v59_v3  ;;  %v69_v6 = vmul.f32 1.442695, %v68_v4  ;;  %v64_v11 = vsel %vm63_vm0, %v59_v3, 0.0  ;;  %p193_p4 = por %p192_p3, %p191_p2 }
  0x31   :  { %v73_v13 = vsel %vm72_vm1, %v68_v4, %v64_v11  ;;  %v66_v19 = vstv %s65_s1  ;;  %v97_v30 = vadd.s32 %v96_v26, %v92_v25 }
  0x32   :  { %126 = vpow2.f32 %v60_v5  ;;  %v67_v21 = vsel %vm63_vm0, %v66_v19, 0.0  ;;  %v75_v22 = vstv %s119_s27  ;;  %p194_p5 = pnand %p193_p4, %p187_p1 }
  0x33   :  { %128 = vpow2.f32 %v69_v6  ;;  %v76_v24 = vsel %vm72_vm1, %v75_v22, %v67_v21  ;;  %vm98_vm2 = vcmp.lt.s32.totalorder %v97_v30, 8 }
  0x34   :  { %v86_v29 = vsub.f32 0.0, %v76_v24 }
  0x3f   :  { %v127_v7 = vpop.eup %126 }
  0x40   :  { %v129_v8 = vpop.eup %128 }
  0x41   :  { %v71_v9 = vadd.f32 %v129_v8, %v127_v7 }
  0x43   :  { %130 = vlog2.f32 %v71_v9 }
  0x50   :  { %v131_v12 = vpop.eup %130 }
  0x51   :  { %v78_v14 = vmul.f32 0.6931472, %v131_v12 }
  0x53   :  { %v79_v15 = vsub.f32 %v73_v13, %v78_v14 }
  0x55   :  { %v80_v16 = vmin.f32 %v79_v15, 0.0 }
  0x57   :  { %v81_v17 = vmul.f32 1.442695, %v80_v16 }
  0x59   :  { %132 = vpow2.f32 %v81_v17 }
  0x66   :  { %v133_v23 = vpop.eup %132 }
  0x67   :  { %v83_v27 = vsub.f32 1.0, %v133_v23 }
  0x69   :  { %v84_v28 = vmax.f32 %v83_v27, 0.0 }
  0x6b   :  { %v85_v31 = vmul.f32 %v84_v28, %v84_v28 }
  0x6d   :  { %v87_v32 = vmul.f32 %v86_v29, %v85_v31 }
  0x6f   :  { %v88_v33 = vmul.f32 %v87_v32, %v80_v16 }
  0x71   :  { %v99_v34 = vsel %vm98_vm2, %v88_v33, 0.0 }
  0x72   :  { %101 = vst [vmem:[#allocation9] sm:$0xff] %v99_v34 }
  0x73   :  { %197 = shalt.err (!%p194_p5)
}
  0x74   :  { %111 = dma.vmem_to_hbm [thread:$0]  %s109_s29, 128, %s257_s3, [#allocation4]  }
  0x75   :  { %212 = dma.done.wait [#allocation4], 128  }
  0x76   :  { %213 = vsyncadd [#allocation4], 4294967168 }
  0x77   :  { %115 = vsyncpa [#allocation3], 1 }
  0x78   :  { %116 = vsyncpa [#allocation7], 1 }
  0x79   :  { %117 = vsyncpa [#allocation4], 1 }
  0x7a   :  { %118 = vsyncpa [#allocation5], 1 }

</bundles_post_ra>
